<compile_context>
chip_gen: v5e
topology: v5e:2x2
jax: 0.10.0
libtpu: 0.0.40
codegen_flags: <defaults>
</compile_context>

<pallas_src>
import functools

import jax
import jax.numpy as jnp
from jax.experimental import pallas as pl
from jax.experimental.pallas import tpu as pltpu


def _make_ce_kernel(ignore_index: int, compute_dtype):
    """Cross-entropy row-block kernel.

    Grid: (num_slices [parallel], inner_steps [arbitrary / reduction]).
    """

    def ce_kernel(logits_ref, target_ref, sum_ref, cnt_ref, loss_acc, cnt_acc):
        i = pl.program_id(1)

        # Start of a slice: reset the (1,1) scalar accumulators.
        @pl.when(i == 0)
        def _():
            loss_acc[...] = jnp.zeros_like(loss_acc)
            cnt_acc[...] = jnp.zeros_like(cnt_acc)

        x = logits_ref[...].astype(compute_dtype)        # (TN, C)
        t = target_ref[...]                              # (TN, 1) int32

        # Numerically stable pieces; the '+ m' cancels in the loss:
        #   loss = logsumexp(x) - x[t] = log(sum(exp(x - m))) - (x - m)[t]
        m = jnp.max(x, axis=-1, keepdims=True)           # (TN, 1)
        xm = x - m
        e = jnp.exp(xm)                                  # bf16 exp on v6e/v7x
        sum_exp = jnp.sum(e.astype(jnp.float32), axis=-1, keepdims=True)

        # Target logit via select against a (1, C) lane iota broadcast against
        # the (TN, 1) targets (no per-row dynamic gather on the vector path).
        col = jax.lax.broadcasted_iota(jnp.int32, (1, x.shape[-1]), 1)
        sel = jnp.where(col == t, xm, jnp.zeros_like(xm))
        tgt_xm = jnp.sum(sel, axis=-1, keepdims=True).astype(jnp.float32)

        valid = t != ignore_index                        # (TN, 1) bool
        loss = jnp.where(valid, jnp.log(sum_exp) - tgt_xm, 0.0)

        # Per-step cross-sublane reduce into single-vreg scalar accumulators
        # (free filler under the HBM/DMA bottleneck; no lane-padded per-row
        # scratch buffers).
        loss_acc[...] += jnp.sum(loss, keepdims=True)                    # (1,1)
        cnt_acc[...] += jnp.sum(valid.astype(jnp.float32), keepdims=True)

        # End of a slice: write the slice partials to the output block.
        @pl.when(i == pl.num_programs(1) - 1)
        def _():
            sum_ref[0] = loss_acc[...]
            cnt_ref[0] = cnt_acc[...]

    return ce_kernel


def _round_up(x, m):
    return -(-x // m) * m


def _tpu_config():
    """Generation-dependent block size, scoped-VMEM limit, slicing, dtype."""
    try:
        kind = jax.devices()[0].device_kind.lower()
    except Exception:  # pragma: no cover
        kind = ""
    if "v7" in kind:
        # 64 MiB physical VMEM, 3.2 TB/s HBM, 2 TensorCores.
        return dict(block_bytes=12 << 20, vmem_limit=48 << 20,
                    num_slices=2, bf16_compute=True)
    if "v6" in kind:
        # 128 MiB physical VMEM, ~1.4 TB/s HBM, 1 TensorCore.
        return dict(block_bytes=12 << 20, vmem_limit=80 << 20,
                    num_slices=1, bf16_compute=True)
    if "v5 lite" in kind or "v5e" in kind or "v5lite" in kind:
        # Small default scoped VMEM; no bf16 VPU/EUP.
        return dict(block_bytes=3 << 20, vmem_limit=24 << 20,
                    num_slices=1, bf16_compute=False)
    # Unknown chip (v4/v5p/interpret/...): conservative defaults.
    return dict(block_bytes=4 << 20, vmem_limit=32 << 20,
                num_slices=1, bf16_compute=False)


@functools.partial(
    jax.jit,
    static_argnames=("ignore_index", "reduction", "num_slices", "block_bytes",
                     "vmem_limit", "bf16_compute"))
def _parallel_ce_impl(logits, target, *, ignore_index, reduction, num_slices,
                      block_bytes, vmem_limit, bf16_compute):
    N, C = logits.shape
    in_itemsize = jnp.dtype(logits.dtype).itemsize

    compute_dtype = (jnp.bfloat16
                     if (bf16_compute and logits.dtype == jnp.bfloat16)
                     else jnp.float32)
    compute_itemsize = jnp.dtype(compute_dtype).itemsize

    # Row-block sizing.  Account for everything that scales with tile_n:
    #   * logits block (x2 double-buffer)
    #   * (tile_n, 1) int32 target block, lane-padded to 128 (512 B/row, x2)
    #   * compute temporaries (xm / exp / select) + one f32 reduce temp
    # and keep a few MiB of headroom for the accumulators / iota / compiler
    # internal scratch.  Respect the sublane packing of the input dtype.
    align = max(8, 32 // in_itemsize)
    headroom = 4 << 20
    bytes_per_row = (2 * C * in_itemsize          # double-buffered logits block
                     + 2 * 128 * 4                # double-buffered padded target
                     + 3 * C * compute_itemsize   # xm / exp / select temporaries
                     + 4 * C)                     # f32 cast for the exp-sum
    t_vmem = max(align,
                 int((vmem_limit - headroom) // bytes_per_row) // align * align)
    t_block = max(align,
                  (block_bytes // max(1, C * in_itemsize)) // align * align)
    rows_per_slice = -(-N // num_slices)
    t_cap = _round_up(max(rows_per_slice, 1), align)
    tile_n = min(t_vmem, t_block, t_cap)
    inner_steps = -(-rows_per_slice // tile_n)
    n_pad = num_slices * inner_steps * tile_n

    target = target.astype(jnp.int32)
    if n_pad != N:
        # Pad tail rows with ignore_index so they contribute 0 loss / 0 count.
        logits = jnp.pad(logits, ((0, n_pad - N), (0, 0)))
        target = jnp.pad(target, (0, n_pad - N), constant_values=ignore_index)
    target2d = target.reshape(n_pad, 1)

    sum_out, cnt_out = pl.pallas_call(
        _make_ce_kernel(ignore_index, compute_dtype),
        out_shape=(jax.ShapeDtypeStruct((num_slices, 1, 1), jnp.float32),
                   jax.ShapeDtypeStruct((num_slices, 1, 1), jnp.float32)),
        grid_spec=pltpu.PrefetchScalarGridSpec(
            num_scalar_prefetch=0,
            grid=(num_slices, inner_steps),
            in_specs=[
                pl.BlockSpec((tile_n, C),
                             lambda s, i: (s * inner_steps + i, 0)),
                pl.BlockSpec((tile_n, 1),
                             lambda s, i: (s * inner_steps + i, 0)),
            ],
            out_specs=[
                pl.BlockSpec((1, 1, 1), lambda s, i: (s, 0, 0)),
                pl.BlockSpec((1, 1, 1), lambda s, i: (s, 0, 0)),
            ],
            scratch_shapes=[pltpu.VMEM((1, 1), jnp.float32),
                            pltpu.VMEM((1, 1), jnp.float32)],
        ),
        compiler_params=pltpu.CompilerParams(
            dimension_semantics=("parallel", "arbitrary"),
            vmem_limit_bytes=vmem_limit),
        cost_estimate=pl.CostEstimate(
            flops=6 * n_pad * C,
            transcendentals=n_pad * C,
            bytes_accessed=n_pad * C * in_itemsize + 4 * n_pad + 8 * num_slices),
    )(logits, target2d)

    total = jnp.sum(sum_out)
    count = jnp.sum(cnt_out)
    if reduction == "mean":
        # NOTE: PyTorch returns NaN when no target is valid; we return 0.
        return total / jnp.maximum(count, 1.0)
    elif reduction == "sum":
        return total
    else:
        raise ValueError(f"unsupported reduction: {reduction}")


def parallel_cross_entropy_loss(logits, target, *, ignore_index=-100,
                                reduction="mean"):
    """logits: [N, C] float; target: [N] int. Returns scalar loss."""
    cfg = _tpu_config()
    return _parallel_ce_impl(
        logits, target, ignore_index=ignore_index, reduction=reduction,
        num_slices=cfg["num_slices"], block_bytes=cfg["block_bytes"],
        vmem_limit=cfg["vmem_limit"], bf16_compute=cfg["bf16_compute"])


def _reference_loss(logits, target, ignore_index=-100, reduction="mean"):
    logp = jax.nn.log_softmax(logits.astype(jnp.float32), axis=-1)
    valid = target != ignore_index
    safe_t = jnp.where(valid, target, 0)
    nll = -jnp.take_along_axis(logp, safe_t[:, None], axis=-1)[:, 0]
    nll = jnp.where(valid, nll, 0.0)
    if reduction == "sum":
        return jnp.sum(nll)
    return jnp.sum(nll) / jnp.maximum(jnp.sum(valid.astype(jnp.float32)), 1.0)


if __name__ == "__main__":
    key = jax.random.PRNGKey(0)
    k1, k2, k3, k4, k5, k6 = jax.random.split(key, 6)

    # Case 1: small, exactly tiled shapes (mean + sum reductions).
    N, C = 16, 32
    logits = jax.random.normal(k1, (N, C), dtype=jnp.float32)
    target = jax.random.randint(k2, (N,), 0, C, dtype=jnp.int32)
    target = target.at[3].set(-100).at[11].set(-100)
    loss = jax.block_until_ready(
        parallel_cross_entropy_loss(logits, target, ignore_index=-100,
                                    reduction="mean"))
    ref = _reference_loss(logits, target, ignore_index=-100)
    assert jnp.allclose(loss, ref, atol=1e-5, rtol=1e-5), (loss, ref)

    loss_s = jax.block_until_ready(
        parallel_cross_entropy_loss(logits, target, ignore_index=-100,
                                    reduction="sum"))
    ref_s = _reference_loss(logits, target, ignore_index=-100, reduction="sum")
    assert jnp.allclose(loss_s, ref_s, atol=1e-4, rtol=1e-5), (loss_s, ref_s)

    # Case 2: ragged N / non-power-of-two C (exercises the tail-padding path).
    N2, C2 = 50, 160
    logits2 = jax.random.normal(k3, (N2, C2), dtype=jnp.float32)
    target2 = jax.random.randint(k4, (N2,), 0, C2, dtype=jnp.int32)
    target2 = target2.at[0].set(-100).at[41].set(-100)
    loss2 = jax.block_until_ready(
        parallel_cross_entropy_loss(logits2, target2, ignore_index=-100,
                                    reduction="mean"))
    ref2 = _reference_loss(logits2, target2, ignore_index=-100)
    assert jnp.allclose(loss2, ref2, atol=1e-5, rtol=1e-5), (loss2, ref2)

    # Case 3: bf16 logits (bf16 compute path on v6e/v7x, f32 elsewhere).
    N3, C3 = 40, 384
    logits3 = jax.random.normal(k5, (N3, C3), dtype=jnp.float32).astype(
        jnp.bfloat16)
    target3 = jax.random.randint(k6, (N3,), 0, C3, dtype=jnp.int32)
    target3 = target3.at[7].set(-100)
    loss3 = jax.block_until_ready(
        parallel_cross_entropy_loss(logits3, target3, ignore_index=-100,
                                    reduction="mean"))
    ref3 = _reference_loss(logits3, target3, ignore_index=-100)
    assert jnp.allclose(loss3, ref3, atol=1e-1, rtol=5e-2), (loss3, ref3)

    print("KERNEL_OK")
</pallas_src>

<mosaic_0001>
module attributes {stable_mosaic.version = 11 : i64} {
  func.func @ce_kernel(%arg0: i32, %arg1: i32, %arg2: memref<16x32xf32, #tpu.memory_space<vmem>>, %arg3: memref<16x1xi32, #tpu.memory_space<vmem>>, %arg4: memref<1x1x1xf32, #tpu.memory_space<vmem>>, %arg5: memref<1x1x1xf32, #tpu.memory_space<vmem>>, %arg6: memref<1x1xf32, #tpu.memory_space<vmem>>, %arg7: memref<1x1xf32, #tpu.memory_space<vmem>>) attributes {dimension_semantics = [#tpu.dimension_semantics<parallel>, #tpu.dimension_semantics<arbitrary>], iteration_bounds = array<i64: 1, 1>, scalar_prefetch = 0 : i64, scratch_operands = 2 : i64, tpu.core_type = #tpu.core_type<tc>, window_params = [{transform_indices = @transform_0, window_bounds = array<i64: 16, 32>}, {transform_indices = @transform_1, window_bounds = array<i64: 16, 1>}, {transform_indices = @transform_2, window_bounds = array<i64: 1, 1, 1>}, {transform_indices = @transform_3, window_bounds = array<i64: 1, 1, 1>}]} {
    %c0_i32 = arith.constant 0 : i32
    %0 = arith.cmpi eq, %arg1, %c0_i32 : i32
    %1 = arith.extui %0 : i1 to i32
    %c0_i32_0 = arith.constant 0 : i32
    %2 = arith.cmpi ne, %1, %c0_i32_0 : i32
    scf.if %2 {
      %cst_20 = arith.constant 0.000000e+00 : f32
      %47 = vector.broadcast %cst_20 : f32 to vector<1x1xf32>
      %c0_21 = arith.constant 0 : index
      %c0_22 = arith.constant 0 : index
      %48 = vector.load %arg6[%c0_21, %c0_22] : memref<1x1xf32, #tpu.memory_space<vmem>>, vector<1x1xf32>
      tpu.vector_store %arg6[%c0_21, %c0_22], %47 {strides = array<i32>} : memref<1x1xf32, #tpu.memory_space<vmem>>, vector<1x1xf32>,
      %cst_23 = arith.constant 0.000000e+00 : f32
      %49 = vector.broadcast %cst_23 : f32 to vector<1x1xf32>
      %c0_24 = arith.constant 0 : index
      %c0_25 = arith.constant 0 : index
      %50 = vector.load %arg7[%c0_24, %c0_25] : memref<1x1xf32, #tpu.memory_space<vmem>>, vector<1x1xf32>
      tpu.vector_store %arg7[%c0_24, %c0_25], %49 {strides = array<i32>} : memref<1x1xf32, #tpu.memory_space<vmem>>, vector<1x1xf32>,
    } else {
    }
    %c0 = arith.constant 0 : index
    %c0_1 = arith.constant 0 : index
    %3 = vector.load %arg2[%c0, %c0_1] : memref<16x32xf32, #tpu.memory_space<vmem>>, vector<16x32xf32>
    %c0_2 = arith.constant 0 : index
    %c0_3 = arith.constant 0 : index
    %4 = vector.load %arg3[%c0_2, %c0_3] : memref<16x1xi32, #tpu.memory_space<vmem>>, vector<16x1xi32>
    %cst = arith.constant dense<0xFF800000> : vector<16xf32>
    %5 = vector.multi_reduction <maximumf>, %3, %cst [1] : vector<16x32xf32> to vector<16xf32>
    %6 = vector.shape_cast %5 : vector<16xf32> to vector<16x1xf32>
    %7 = vector.broadcast %6 : vector<16x1xf32> to vector<16x32xf32>
    %8 = arith.subf %3, %7 : vector<16x32xf32>
    %9 = math.exp %8 : vector<16x32xf32>
    %cst_4 = arith.constant dense<0.000000e+00> : vector<16xf32>
    %10 = vector.multi_reduction <add>, %9, %cst_4 [1] : vector<16x32xf32> to vector<16xf32>
    %11 = vector.shape_cast %10 : vector<16xf32> to vector<16x1xf32>
    %12 = tpu.iota {dimensions = array<i32: 1>} : vector<1x32xi32>
    %13 = vector.broadcast %12 : vector<1x32xi32> to vector<16x32xi32>
    %14 = vector.broadcast %4 : vector<16x1xi32> to vector<16x32xi32>
    %15 = arith.cmpi eq, %13, %14 : vector<16x32xi32>
    %cst_5 = arith.constant 0.000000e+00 : f32
    %16 = vector.broadcast %cst_5 : f32 to vector<16x32xf32>
    %17 = arith.select %15, %8, %16 : vector<16x32xi1>, vector<16x32xf32>
    %cst_6 = arith.constant dense<0.000000e+00> : vector<16xf32>
    %18 = vector.multi_reduction <add>, %17, %cst_6 [1] : vector<16x32xf32> to vector<16xf32>
    %19 = vector.shape_cast %18 : vector<16xf32> to vector<16x1xf32>
    %c-100_i32 = arith.constant -100 : i32
    %20 = vector.broadcast %c-100_i32 : i32 to vector<16x1xi32>
    %21 = arith.cmpi ne, %4, %20 : vector<16x1xi32>
    %22 = math.log %11 : vector<16x1xf32>
    %23 = arith.subf %22, %19 : vector<16x1xf32>
    %cst_7 = arith.constant 0.000000e+00 : f32
    %24 = vector.broadcast %cst_7 : f32 to vector<16x1xf32>
    %25 = arith.select %21, %23, %24 : vector<16x1xi1>, vector<16x1xf32>
    %c0_8 = arith.constant 0 : index
    %c0_9 = arith.constant 0 : index
    %26 = vector.load %arg6[%c0_8, %c0_9] : memref<1x1xf32, #tpu.memory_space<vmem>>, vector<1x1xf32>
    %27 = vector.shape_cast %25 : vector<16x1xf32> to vector<1x16x1xf32>
    %cst_10 = arith.constant dense<0.000000e+00> : vector<1xf32>
    %28 = vector.multi_reduction <add>, %27, %cst_10 [1, 2] : vector<1x16x1xf32> to vector<1xf32>
    %29 = vector.shape_cast %28 : vector<1xf32> to vector<1x1x1xf32>
    %30 = vector.extract %29[0, 0, 0] : f32 from vector<1x1x1xf32>
    %31 = vector.broadcast %30 : f32 to vector<1x1xf32>
    %32 = arith.addf %26, %31 : vector<1x1xf32>
    %c0_11 = arith.constant 0 : index
    %c0_12 = arith.constant 0 : index
    %33 = vector.load %arg6[%c0_11, %c0_12] : memref<1x1xf32, #tpu.memory_space<vmem>>, vector<1x1xf32>
    tpu.vector_store %arg6[%c0_11, %c0_12], %32 {strides = array<i32>} : memref<1x1xf32, #tpu.memory_space<vmem>>, vector<1x1xf32>,
    %c0_13 = arith.constant 0 : index
    %c0_14 = arith.constant 0 : index
    %34 = vector.load %arg7[%c0_13, %c0_14] : memref<1x1xf32, #tpu.memory_space<vmem>>, vector<1x1xf32>
    %35 = arith.extui %21 : vector<16x1xi1> to vector<16x1xi32>
    %36 = arith.sitofp %35 : vector<16x1xi32> to vector<16x1xf32>
    %37 = vector.shape_cast %36 : vector<16x1xf32> to vector<1x16x1xf32>
    %cst_15 = arith.constant dense<0.000000e+00> : vector<1xf32>
    %38 = vector.multi_reduction <add>, %37, %cst_15 [1, 2] : vector<1x16x1xf32> to vector<1xf32>
    %39 = vector.shape_cast %38 : vector<1xf32> to vector<1x1x1xf32>
    %40 = vector.extract %39[0, 0, 0] : f32 from vector<1x1x1xf32>
    %41 = vector.broadcast %40 : f32 to vector<1x1xf32>
    %42 = arith.addf %34, %41 : vector<1x1xf32>
    %c0_16 = arith.constant 0 : index
    %c0_17 = arith.constant 0 : index
    %43 = vector.load %arg7[%c0_16, %c0_17] : memref<1x1xf32, #tpu.memory_space<vmem>>, vector<1x1xf32>
    tpu.vector_store %arg7[%c0_16, %c0_17], %42 {strides = array<i32>} : memref<1x1xf32, #tpu.memory_space<vmem>>, vector<1x1xf32>,
    %c0_i32_18 = arith.constant 0 : i32
    %44 = arith.cmpi eq, %arg1, %c0_i32_18 : i32
    %45 = arith.extui %44 : i1 to i32
    %c0_i32_19 = arith.constant 0 : i32
    %46 = arith.cmpi ne, %45, %c0_i32_19 : i32
    scf.if %46 {
      %c0_20 = arith.constant 0 : index
      %c0_21 = arith.constant 0 : index
      %47 = vector.load %arg6[%c0_20, %c0_21] : memref<1x1xf32, #tpu.memory_space<vmem>>, vector<1x1xf32>
      %c0_22 = arith.constant 0 : index
      %c0_23 = arith.constant 0 : index
      %c0_24 = arith.constant 0 : index
      %48 = vector.load %arg4[%c0_22, %c0_23, %c0_24] : memref<1x1x1xf32, #tpu.memory_space<vmem>>, vector<1x1x1xf32>
      %49 = vector.shape_cast %48 : vector<1x1x1xf32> to vector<1x1xf32>
      %50 = vector.shape_cast %47 : vector<1x1xf32> to vector<1x1x1xf32>
      tpu.vector_store %arg4[%c0_22, %c0_23, %c0_24], %50 {strides = array<i32>} : memref<1x1x1xf32, #tpu.memory_space<vmem>>, vector<1x1x1xf32>,
      %c0_25 = arith.constant 0 : index
      %c0_26 = arith.constant 0 : index
      %51 = vector.load %arg7[%c0_25, %c0_26] : memref<1x1xf32, #tpu.memory_space<vmem>>, vector<1x1xf32>
      %c0_27 = arith.constant 0 : index
      %c0_28 = arith.constant 0 : index
      %c0_29 = arith.constant 0 : index
      %52 = vector.load %arg5[%c0_27, %c0_28, %c0_29] : memref<1x1x1xf32, #tpu.memory_space<vmem>>, vector<1x1x1xf32>
      %53 = vector.shape_cast %52 : vector<1x1x1xf32> to vector<1x1xf32>
      %54 = vector.shape_cast %51 : vector<1x1xf32> to vector<1x1x1xf32>
      tpu.vector_store %arg5[%c0_27, %c0_28, %c0_29], %54 {strides = array<i32>} : memref<1x1x1xf32, #tpu.memory_space<vmem>>, vector<1x1x1xf32>,
    } else {
    }
    return
  }
  func.func @transform_0(%arg0: i32, %arg1: i32) -> (i32, i32) {
    %c1_i32 = arith.constant 1 : i32
    %0 = arith.muli %arg0, %c1_i32 : i32
    %1 = arith.addi %0, %arg1 : i32
    %c0_i32 = arith.constant 0 : i32
    %c0_i32_0 = arith.constant 0 : i32
    return %1, %c0_i32 : i32, i32
  }
  func.func @transform_1(%arg0: i32, %arg1: i32) -> (i32, i32) {
    %c1_i32 = arith.constant 1 : i32
    %0 = arith.muli %arg0, %c1_i32 : i32
    %1 = arith.addi %0, %arg1 : i32
    %c0_i32 = arith.constant 0 : i32
    %c0_i32_0 = arith.constant 0 : i32
    return %1, %c0_i32 : i32, i32
  }
  func.func @transform_2(%arg0: i32, %arg1: i32) -> (i32, i32, i32) {
    %c0_i32 = arith.constant 0 : i32
    %c0_i32_0 = arith.constant 0 : i32
    %c0_i32_1 = arith.constant 0 : i32
    return %arg0, %c0_i32, %c0_i32_0 : i32, i32, i32
  }
  func.func @transform_3(%arg0: i32, %arg1: i32) -> (i32, i32, i32) {
    %c0_i32 = arith.constant 0 : i32
    %c0_i32_0 = arith.constant 0 : i32
    %c0_i32_1 = arith.constant 0 : i32
    return %arg0, %c0_i32, %c0_i32_0 : i32, i32, i32
  }
}

</mosaic_0001>

<bundles_post_ra>
// kernel: _parallel_ce_impl.1
= control target key start
LH: loop header
LB: loop body
LE: loop exit
PB: predicated region body
PF: predicated region fallthrough
CT: control target
= control target key end

     0   :  { %9 = vsyncpa [#allocation5], 0  ;;  %vm70_vm0 = vcmask 261120   ;;  %v278_v3 = vmov 0   ;;  %s340_s0 = inlined_call_operand.vmem [shape: f32[16,32], index: 0, kind: input, shape index: {}]   ;;  %s341_s1 = inlined_call_operand.vmem [shape: s32[16,1], index: 1, kind: input, shape index: {}]   ;;  %s342_s2 = inlined_call_operand.hbm [shape: f32[1,1,1], index: 2, kind: output, shape index: {0}]   ;;  %s343_s3 = inlined_call_operand.hbm [shape: f32[1,1,1], index: 3, kind: output, shape index: {1}]  }
   0x1   :  { %v66_v0 = vld [vmem:[%s340_s0] sm:$0xff]  ;;  %216 = vset.pattern.permute.xlu1 %v278_v3  ;;  %217 = vset.pattern.permute.xlu0 %v278_v3 }
   0x2   :  { %v68_v1 = vld [vmem:[%s341_s1] sm:$0xff]  ;;  %v71_v2 = vsel %vm70_vm0, %v66_v0, -inf }
   0x3   :  { %10 = vsyncpa [#allocation7], 0  ;;  %72 = vmax.xlane.f32.xlu0 %v71_v2  ;;  %92 = vperm.xlu1 %216, %v68_v1   ;;  %v67_v4 = vld [vmem:[%s340_s0 + $0x8] sm:$0xff]  ;;  %v89_v7 = vlaneseq  ;;  %vm107_vm3 = vcmp.ne.s32.totalorder %v68_v1, 4294967196  ;;  %v279_v25 = vmov 0.0   ;;  %vm118_vm5 = vcmask 7168  }
   0x4   :  { %v74_v5 = vsel %vm70_vm0, %v67_v4, -inf  ;;  %v69_v6 = vld [vmem:[%s341_s1 + $0x8] sm:$0xff]  ;;  %v206_v26 = vsel %vm107_vm3, 1.0, %v279_v25  ;;  %vm63_vm6 = vcmask 0   ;;  %s280_s20 = smov [#allocation4]   ;;  %s169_s24 = sshll.u32 %s342_s2, 4  ;;  %s170_s24 = int_to_ptr.hbm [resolvable:$true] %s169_s24 }
   0x5   :  { %v90_v8 = vand.u32 127, %v89_v7  ;;  %vm108_vm4 = vcmp.ne.s32.totalorder %v69_v6, 4294967196  ;;  %v140_v28 = vsel %vm118_vm5, %v206_v26, 0.0  ;;  %64 = vst.msk [vmem:[#allocation2] sm:$0x1] %vm63_vm6, %v279_v25  ;;  %s167_s21 = sshll.u32 %s280_s20, 4  ;;  %s168_s21 = int_to_ptr.vmem [resolvable:$true] %s167_s21 }
   0x6   :  { %v207_v27 = vsel %vm108_vm4, 1.0, %v279_v25  ;;  %65 = vst.msk [vmem:[#allocation3] sm:$0x1] %vm63_vm6, %v279_v25  ;;  %s281_s25 = smov [#allocation6]   ;;  %s180_s29 = sshll.u32 %s343_s3, 4  ;;  %s181_s29 = int_to_ptr.hbm [resolvable:$true] %s180_s29 }
   0x7   :  { %v141_v29 = vsel %vm118_vm5, %v207_v27, 0.0  ;;  %s178_s26 = sshll.u32 %s281_s25, 4  ;;  %s179_s26 = int_to_ptr.vmem [resolvable:$true] %s178_s26 }
   0x8   :  { %v142_v30 = vadd.f32 %v141_v29, %v140_v28 }
   0xb   :  { %75 = vmax.xlane.f32.xlu0 %v74_v5  ;;  %95 = vperm.xlu1 %216, %v69_v6  }
   0xc   :  { %v117_v60 = vld [vmem:[#allocation2] sm:$0x1] }
   0xd   :  { %v135_v61 = vld [vmem:[#allocation3] sm:$0x1] }
  0x75   :  { %v93_v9 = vpop.permute.xlu1 %92 }
  0x76   :  { %v73_v10 = vpop.xlane.xlu0 %72  ;;  %vm97_vm1 = vcmp.eq.s32.totalorder %v90_v8, %v93_v9 }
  0x77   :  { %v77_v11 = vsub.f32 %v66_v0, %v73_v10 }
  0x79   :  { %v79_v12 = vmul.f32 1.442695, %v77_v11  ;;  %v99_v13 = vsel %vm97_vm1, %v77_v11, 0.0 }
  0x7a   :  { %v101_v14 = vsel %vm70_vm0, %v99_v13, 0.0 }
  0x7b   :  { %218 = vpow2.f32 %v79_v12  ;;  %102 = vadd.xlane.f32.xlu0 %v101_v14 }
  0x7d   :  { %v96_v15 = vpop.permute.xlu1 %95 }
  0x7e   :  { %v76_v16 = vpop.xlane.xlu0 %75  ;;  %vm98_vm2 = vcmp.eq.s32.totalorder %v90_v8, %v96_v15 }
  0x7f   :  { %v78_v17 = vsub.f32 %v67_v4, %v76_v16 }
  0x81   :  { %v219_v18 = vpop.eup %218  ;;  %v81_v19 = vmul.f32 1.442695, %v78_v17  ;;  %v100_v20 = vsel %vm98_vm2, %v78_v17, 0.0 }
  0x82   :  { %v83_v21 = vsel %vm70_vm0, %v219_v18, 0.0  ;;  %v104_v22 = vsel %vm70_vm0, %v100_v20, 0.0 }
  0x83   :  { %220 = vpow2.f32 %v81_v19  ;;  %84 = vadd.xlane.f32.xlu2 %v83_v21  ;;  %105 = vadd.xlane.f32.xlu1 %v104_v22 }
  0x84   :  { %143 = vadd.xlane.f32.xlu0 %v142_v30 }
  0x89   :  { %v221_v23 = vpop.eup %220 }
  0x8a   :  { %v86_v24 = vsel %vm70_vm0, %v221_v23, 0.0 }
  0x8b   :  { %87 = vadd.xlane.f32.xlu2 %v86_v24 }
  0xee   :  { %v103_v35 = vpop.xlane.xlu0 %102 }
  0xf6   :  { %v85_v31 = vpop.xlane.xlu2 %84  ;;  %v106_v39 = vpop.xlane.xlu1 %105 }
  0xf7   :  { %222 = vlog2.f32 %v85_v31  ;;  %v144_v46 = vpop.xlane.xlu0 %143 }
  0xf8   :  { %v145_v47 = vrot.slane %v144_v46, 4 }
  0xfa   :  { %v146_v48 = vadd.f32 %v145_v47, %v144_v46 }
  0xfc   :  { %v147_v49 = vrot.slane %v146_v48, 2 }
  0xfd   :  { %v223_v32 = vpop.eup %222 }
  0xfe   :  { %v88_v33 = vpop.xlane.xlu2 %87  ;;  %v110_v34 = vmul.f32 0.6931472, %v223_v32  ;;  %v148_v53 = vadd.f32 %v147_v49, %v146_v48 }
  0xff   :  { %224 = vlog2.f32 %v88_v33 }
 0x100   :  { %v113_v36 = vsub.f32 %v110_v34, %v103_v35  ;;  %v149_v56 = vrot.slane %v148_v53, 1 }
 0x102   :  { %v115_v41 = vsel %vm107_vm3, %v113_v36, 0.0  ;;  %v150_v59 = vadd.f32 %v149_v56, %v148_v53 }
 0x103   :  { %v119_v43 = vsel %vm118_vm5, %v115_v41, 0.0 }
 0x105   :  { %v225_v37 = vpop.eup %224 }
 0x106   :  { %v112_v38 = vmul.f32 0.6931472, %v225_v37 }
 0x108   :  { %v114_v40 = vsub.f32 %v112_v38, %v106_v39 }
 0x10a   :  { %v116_v42 = vsel %vm108_vm4, %v114_v40, 0.0 }
 0x10b   :  { %v120_v44 = vsel %vm118_vm5, %v116_v42, 0.0 }
 0x10c   :  { %v121_v45 = vadd.f32 %v120_v44, %v119_v43 }
 0x10e   :  { %122 = vadd.xlane.f32.xlu2 %v121_v45 }
 0x181   :  { %v123_v50 = vpop.xlane.xlu2 %122 }
 0x182   :  { %v124_v51 = vrot.slane %v123_v50, 4 }
 0x184   :  { %v125_v52 = vadd.f32 %v124_v51, %v123_v50 }
 0x186   :  { %v126_v54 = vrot.slane %v125_v52, 2 }
 0x188   :  { %v127_v55 = vadd.f32 %v126_v54, %v125_v52 }
 0x18a   :  { %v128_v57 = vrot.slane %v127_v55, 1 }
 0x18c   :  { %v129_v58 = vadd.f32 %v128_v57, %v127_v55 }
 0x18e   :  { %208 = vpush %v129_v58 }
 0x18f   :  { %210 = vpush %v150_v59 }
 0x1bf   :  { %s209_s0 = spop %208 }
 0x1c0   :  { %v131_v62 = vstv %s209_s0  ;;  %s211_s1 = spop %210 }
 0x1c1   :  { %v132_v63 = vadd.f32 %v131_v62, %v117_v60  ;;  %v152_v0 = vstv %s211_s1 }
 0x1c2   :  { %v153_v1 = vadd.f32 %v152_v0, %v135_v61 }
 0x1c3   :  { %134 = vst.msk [vmem:[#allocation2] sm:$0x1] %vm63_vm6, %v132_v63 }
 0x1c4   :  { %154 = vst.msk [vmem:[#allocation3] sm:$0x1] %vm63_vm6, %v153_v1 }
 0x1ca   :  { %v158_v2 = vld [vmem:[#allocation2] sm:$0x1] }
 0x1cb   :  { %159 = vst.msk [vmem:[#allocation4] sm:$0x1] %vm63_vm6, %v158_v2  ;;  %v160_v3 = vld [vmem:[#allocation3] sm:$0x1] }
 0x1cc   :  { %172 = dma.vmem_to_hbm [thread:$0]  %s168_s21, 16, %s170_s24, [#allocation5]   ;;  %161 = vst.msk [vmem:[#allocation6] sm:$0x1] %vm63_vm6, %v160_v3 }
 0x1cd   :  { %183 = dma.vmem_to_hbm [thread:$0]  %s179_s26, 16, %s181_s29, [#allocation7]  }
 0x1ce   :  { %274 = dma.done.wait [#allocation5], 16  }
 0x1cf   :  { %275 = vsyncadd [#allocation5], 4294967280 }
 0x1d0   :  { %276 = dma.done.wait [#allocation7], 16  }
 0x1d1   :  { %277 = vsyncadd [#allocation7], 4294967280 }
 0x1d2   :  { %192 = vsyncpa [#allocation5], 1 }
 0x1d3   :  { %193 = vsyncpa [#allocation7], 1 }

</bundles_post_ra>
